<compile_context>
chip_gen: v6e
topology: v6e:2x2x1
jax: 0.10.0
libtpu: 0.0.40
codegen_flags: <defaults>
</compile_context>

<pallas_src>
import functools
import math

import jax
import jax.numpy as jnp
import numpy as np
from jax import lax
from jax.experimental import pallas as pl
from jax.experimental.pallas import tpu as pltpu


_MASK_VALUE = -0.7 * float(np.finfo(np.float32).max)


# -----------------------------------------------------------------------------
# Tile helpers: snap to (8, 128)-aligned divisors, fall back to the full dim
# (a block equal to the full array dim is always legal).
# -----------------------------------------------------------------------------
def _pick_tile(dim, target, align):
    if dim <= target:
        return dim
    t = (target // align) * align
    while t >= align:
        if dim % t == 0:
            return t
        t -= align
    # No aligned divisor <= target: use the full dim (always a legal block).
    return dim


def _pick_group_width(H, hd, target=512):
    """Head-group width for the flash kernel: a multiple of hd that divides H
    and is lane-dense (multiple of 128, or the whole embedding)."""
    if H <= target:
        return H
    step = (hd * 128) // math.gcd(hd, 128)   # lcm(hd, 128)
    t = (target // step) * step
    while t >= step:
        if H % t == 0:
            return t
        t -= step
    return H


# -----------------------------------------------------------------------------
# One-time weight preparation (hoisted out of the forward path).
# PyTorch Linear: y = x @ W.T + b.  1/sqrt(head_dim) is folded into Wq / bq.
# -----------------------------------------------------------------------------
def prepare_attention_params(params, num_heads, compute_dtype=jnp.float32):
    W_attn = params["W_attn"]          # (3H, H)
    b_attn = params["b_attn"]          # (3H,)
    W_proj = params["W_proj"]          # (H, H)
    b_proj = params["b_proj"]          # (H,)
    H = W_attn.shape[1]
    assert H % num_heads == 0
    hd = H // num_heads
    scale = 1.0 / math.sqrt(hd)
    # NOTE: folding the scale before the (optional) bf16 cast slightly changes
    # weight quantization vs. scaling activations; well within bf16 tolerance.
    wq = (W_attn[:H].T.astype(jnp.float32) * scale).astype(compute_dtype)
    wk = W_attn[H:2 * H].T.astype(compute_dtype)
    wv = W_attn[2 * H:].T.astype(compute_dtype)
    bq = (b_attn[:H].astype(jnp.float32) * scale).reshape(1, H)
    bk = b_attn[H:2 * H].astype(jnp.float32).reshape(1, H)
    bv = b_attn[2 * H:].astype(jnp.float32).reshape(1, H)
    wo = W_proj.T.astype(compute_dtype)
    bo = b_proj.astype(jnp.float32).reshape(1, H)
    return dict(wq=wq, wk=wk, wv=wv, bq=bq, bk=bk, bv=bv, wo=wo, bo=bo,
                num_heads=num_heads, compute_dtype=compute_dtype)


# -----------------------------------------------------------------------------
# Fused QKV projection: one pass over x, three MXU matmuls per step, three
# lane-dense (B*T, H) outputs (exactly the layout the flash kernel consumes).
# -----------------------------------------------------------------------------
def _qkv_kernel(x_ref, wq_ref, wk_ref, wv_ref, bq_ref, bk_ref, bv_ref,
                q_ref, k_ref, v_ref, accq_ref, acck_ref, accv_ref):
    kk = pl.program_id(2)

    @pl.when(kk == 0)
    def _():
        accq_ref[...] = jnp.zeros(accq_ref.shape, jnp.float32)
        acck_ref[...] = jnp.zeros(acck_ref.shape, jnp.float32)
        accv_ref[...] = jnp.zeros(accv_ref.shape, jnp.float32)

    x = x_ref[...]
    accq_ref[...] += jnp.dot(x, wq_ref[...], preferred_element_type=jnp.float32)
    acck_ref[...] += jnp.dot(x, wk_ref[...], preferred_element_type=jnp.float32)
    accv_ref[...] += jnp.dot(x, wv_ref[...], preferred_element_type=jnp.float32)

    @pl.when(kk == pl.num_programs(2) - 1)
    def _():
        q_ref[...] = (accq_ref[...] + bq_ref[...]).astype(q_ref.dtype)
        k_ref[...] = (acck_ref[...] + bk_ref[...]).astype(k_ref.dtype)
        v_ref[...] = (accv_ref[...] + bv_ref[...]).astype(v_ref.dtype)


def pallas_qkv_projection(x2d, prep, *, tm=256, tn=256, tk=512):
    M, K = x2d.shape
    H = prep["wq"].shape[1]
    cd = x2d.dtype
    tm = _pick_tile(M, tm, 8)
    tn = _pick_tile(H, tn, 128)
    tk = _pick_tile(K, tk, 128)
    return pl.pallas_call(
        _qkv_kernel,
        out_shape=tuple(jax.ShapeDtypeStruct((M, H), cd) for _ in range(3)),
        grid_spec=pltpu.PrefetchScalarGridSpec(
            num_scalar_prefetch=0,
            grid=(M // tm, H // tn, K // tk),
            in_specs=[
                pl.BlockSpec((tm, tk), lambda i, j, k: (i, k)),      # x
                pl.BlockSpec((tk, tn), lambda i, j, k: (k, j)),      # Wq
                pl.BlockSpec((tk, tn), lambda i, j, k: (k, j)),      # Wk
                pl.BlockSpec((tk, tn), lambda i, j, k: (k, j)),      # Wv
                pl.BlockSpec((1, tn), lambda i, j, k: (0, j)),       # bq
                pl.BlockSpec((1, tn), lambda i, j, k: (0, j)),       # bk
                pl.BlockSpec((1, tn), lambda i, j, k: (0, j)),       # bv
            ],
            out_specs=[
                pl.BlockSpec((tm, tn), lambda i, j, k: (i, j)),
                pl.BlockSpec((tm, tn), lambda i, j, k: (i, j)),
                pl.BlockSpec((tm, tn), lambda i, j, k: (i, j)),
            ],
            scratch_shapes=[pltpu.VMEM((tm, tn), jnp.float32)] * 3,
        ),
        compiler_params=pltpu.CompilerParams(
            dimension_semantics=("parallel", "parallel", "arbitrary")),
    )(x2d, prep["wq"], prep["wk"], prep["wv"], prep["bq"], prep["bk"], prep["bv"])


# -----------------------------------------------------------------------------
# Plain tiled matmul + bias (used for c_proj).
# -----------------------------------------------------------------------------
def _linear_kernel(x_ref, w_ref, b_ref, o_ref, acc_ref):
    k = pl.program_id(2)

    @pl.when(k == 0)
    def _():
        acc_ref[...] = jnp.zeros(acc_ref.shape, jnp.float32)

    acc_ref[...] += jnp.dot(x_ref[...], w_ref[...],
                            preferred_element_type=jnp.float32)

    @pl.when(k == pl.num_programs(2) - 1)
    def _():
        o_ref[...] = (acc_ref[...] + b_ref[...]).astype(o_ref.dtype)


def pallas_linear(x2d, w, b, *, out_dtype=None, tm=256, tn=256, tk=512):
    M, K = x2d.shape
    _, N = w.shape
    out_dtype = out_dtype or x2d.dtype
    tm = _pick_tile(M, tm, 8)
    tn = _pick_tile(N, tn, 128)
    tk = _pick_tile(K, tk, 128)
    b2 = b.reshape(1, N).astype(jnp.float32)
    return pl.pallas_call(
        _linear_kernel,
        out_shape=jax.ShapeDtypeStruct((M, N), out_dtype),
        grid_spec=pltpu.PrefetchScalarGridSpec(
            num_scalar_prefetch=0,
            grid=(M // tm, N // tn, K // tk),
            in_specs=[
                pl.BlockSpec((tm, tk), lambda i, j, k: (i, k)),
                pl.BlockSpec((tk, tn), lambda i, j, k: (k, j)),
                pl.BlockSpec((1, tn), lambda i, j, k: (0, j)),
            ],
            out_specs=pl.BlockSpec((tm, tn), lambda i, j, k: (i, j)),
            scratch_shapes=[pltpu.VMEM((tm, tn), jnp.float32)],
        ),
        compiler_params=pltpu.CompilerParams(
            dimension_semantics=("parallel", "parallel", "arbitrary")),
    )(x2d, w, b2)


# -----------------------------------------------------------------------------
# Flash attention: grid = (B, head_group, q_tile, kv_tile), online softmax.
# Reads q/k/v straight from the (B, T, H) projection outputs and writes (B, T, H);
# per grid step it handles a lane-dense group of hg = gw // hd heads.
# -----------------------------------------------------------------------------
def _flash_kernel(*args, tq, tk, hg, hd, has_padding):
    if has_padding:
        (pm_q_ref, pm_k_ref, q_ref, k_ref, v_ref, o_ref,
         m_sc, l_sc, acc_sc) = args
    else:
        q_ref, k_ref, v_ref, o_ref, m_sc, l_sc, acc_sc = args
        pm_q_ref = pm_k_ref = None

    qi = pl.program_id(2)
    ki = pl.program_id(3)
    q_start = qi * tq
    k_start = ki * tk

    @pl.when(ki == 0)
    def _init():
        m_sc[...] = jnp.full(m_sc.shape, -jnp.inf, jnp.float32)
        l_sc[...] = jnp.zeros(l_sc.shape, jnp.float32)
        acc_sc[...] = jnp.zeros(acc_sc.shape, jnp.float32)

    def update_tile(allowed):
        # allowed: None (fully visible, unpadded) or a (tq, tk) bool mask.
        qf = q_ref[0]                       # (tq, hg*hd)   scale already folded in
        kf = k_ref[0]                       # (tk, hg*hd)
        vf = v_ref[0]                       # (tk, hg*hd)
        for h in range(hg):                 # static unrolled per-head loop
            sl = slice(h * hd, (h + 1) * hd)
            # (tq, hd) x (tk, hd) contracting on hd -> (tq, tk), f32 accumulate.
            s = lax.dot_general(qf[:, sl], kf[:, sl],
                                (((1,), (1,)), ((), ())),
                                preferred_element_type=jnp.float32)
            if allowed is not None:
                s = jnp.where(allowed, s, _MASK_VALUE)
            m_prev = m_sc[h]                                     # (tq, 1)
            m_new = jnp.maximum(m_prev, jnp.max(s, axis=-1, keepdims=True))
            alpha = jnp.exp(m_prev - m_new)
            p = jnp.exp(s - m_new)
            if allowed is not None:
                # Required for fully-masked (padded) rows where m == _MASK_VALUE.
                p = jnp.where(allowed, p, 0.0)
            l_sc[h] = alpha * l_sc[h] + jnp.sum(p, axis=-1, keepdims=True)
            acc_sc[h] = alpha * acc_sc[h] + jnp.dot(
                p.astype(vf.dtype), vf[:, sl], preferred_element_type=jnp.float32)
            m_sc[h] = m_new

    # Tile classification (the K/V DMAs for skipped tiles are already elided by
    # the clamped index maps; pl.when elides the compute).
    below_last = k_start <= q_start + (tq - 1)            # tile contributes
    fully_visible = q_start >= k_start + (tk - 1)         # no causal masking needed

    if has_padding:
        @pl.when(below_last)
        def _():
            q_pos = q_start + lax.broadcasted_iota(jnp.int32, (tq, tk), 0)
            k_pos = k_start + lax.broadcasted_iota(jnp.int32, (tq, tk), 1)
            pad_ok = (pm_q_ref[0] > 0.5) & (pm_k_ref[0] > 0.5)   # (tq,1)&(1,tk)
            allowed = ((q_pos >= k_pos) & pad_ok) | (q_pos == k_pos)
            update_tile(allowed)
    else:
        @pl.when(fully_visible)
        def _():                       # fast path: no iota / compare / where work
            update_tile(None)

        @pl.when(jnp.logical_and(below_last, jnp.logical_not(fully_visible)))
        def _():                       # diagonal-crossing tiles only
            q_pos = q_start + lax.broadcasted_iota(jnp.int32, (tq, tk), 0)
            k_pos = k_start + lax.broadcasted_iota(jnp.int32, (tq, tk), 1)
            update_tile(q_pos >= k_pos)

    @pl.when(ki == pl.num_programs(3) - 1)
    def _finalize():
        outs = []
        for h in range(hg):
            l = l_sc[h]
            inv = pl.reciprocal(l, approx=True)     # EUP slot
            inv = inv * (2.0 - l * inv)             # one Newton step -> ~f32 accuracy
            outs.append(acc_sc[h] * inv)
        o_tile = outs[0] if hg == 1 else jnp.concatenate(outs, axis=-1)
        o_ref[0] = o_tile.astype(o_ref.dtype)       # lane-dense (tq, gw) store


# -----------------------------------------------------------------------------
# Full forward pass.
# -----------------------------------------------------------------------------
def causal_self_attention(x, prep, padding_mask=None, *,
                          tq=256, tk=512, gw_target=512):
    B, T, H = x.shape
    nh = prep["num_heads"]
    hd = H // nh
    cd = prep["compute_dtype"]
    has_padding = padding_mask is not None

    # --- fused QKV projection: three lane-dense (B*T, H) outputs, no transposes
    x2d = x.reshape(B * T, H).astype(cd)
    q2d, k2d, v2d = pallas_qkv_projection(x2d, prep)
    q = q2d.reshape(B, T, H)        # free views, directly consumed by the flash kernel
    k = k2d.reshape(B, T, H)
    v = v2d.reshape(B, T, H)

    # --- flash attention over head groups ---
    tq = _pick_tile(T, tq, 8)
    tk = _pick_tile(T, tk, 128)
    gw = _pick_group_width(H, hd, gw_target)
    hg = gw // hd
    G = H // gw
    nq, nk = T // tq, T // tk

    def kv_block(qi, ki):
        # Clamp above-diagonal kv tiles to the last needed block so their DMAs
        # are skipped (same block index as the previous step).
        return jnp.minimum(ki, (qi * tq + tq - 1) // tk)

    in_specs = [
        pl.BlockSpec((1, tq, gw), lambda b, g, qi, ki: (b, qi, g)),                # q
        pl.BlockSpec((1, tk, gw), lambda b, g, qi, ki: (b, kv_block(qi, ki), g)),  # k
        pl.BlockSpec((1, tk, gw), lambda b, g, qi, ki: (b, kv_block(qi, ki), g)),  # v
    ]
    inputs = [q, k, v]
    if has_padding:
        pm = padding_mask.astype(jnp.float32)
        pm_q = pm.reshape(B, T, 1)
        pm_k = pm.reshape(B, 1, T)
        in_specs = [
            pl.BlockSpec((1, tq, 1), lambda b, g, qi, ki: (b, qi, 0)),
            pl.BlockSpec((1, 1, tk), lambda b, g, qi, ki: (b, 0, kv_block(qi, ki))),
        ] + in_specs
        inputs = [pm_q, pm_k] + inputs

    attn = pl.pallas_call(
        functools.partial(_flash_kernel, tq=tq, tk=tk, hg=hg, hd=hd,
                          has_padding=has_padding),
        out_shape=jax.ShapeDtypeStruct((B, T, H), cd),
        grid_spec=pltpu.PrefetchScalarGridSpec(
            num_scalar_prefetch=0,
            grid=(B, G, nq, nk),
            in_specs=in_specs,
            out_specs=pl.BlockSpec((1, tq, gw), lambda b, g, qi, ki: (b, qi, g)),
            scratch_shapes=[
                pltpu.VMEM((hg, tq, 1), jnp.float32),    # running max (per head)
                pltpu.VMEM((hg, tq, 1), jnp.float32),    # running sum (per head)
                pltpu.VMEM((hg, tq, hd), jnp.float32),   # output accumulator
            ],
        ),
        compiler_params=pltpu.CompilerParams(
            dimension_semantics=("parallel", "parallel", "parallel", "arbitrary")),
    )(*inputs)

    # --- output projection (attn is already (B, T, H): reshape is free) ---
    y2d = attn.reshape(B * T, H)
    out = pallas_linear(y2d, prep["wo"], prep["bo"], out_dtype=cd)
    return out.reshape(B, T, H).astype(x.dtype)


# -----------------------------------------------------------------------------
# Pure-JAX reference (mirrors the PyTorch forward in eval mode).
# -----------------------------------------------------------------------------
def build_attn_bias(B, T, padding_mask=None, dtype=jnp.float32):
    attn_mask = jnp.broadcast_to(jnp.tril(jnp.ones((T, T), dtype=bool)), (B, T, T))
    if padding_mask is not None:
        m = padding_mask.astype(bool)
        outer = m[:, :, None] & m[:, None, :]
        outer = outer | jnp.eye(T, dtype=bool)[None]
        attn_mask = attn_mask & outer
    neg = jnp.finfo(dtype).min
    return jnp.where(attn_mask, jnp.asarray(1.0, dtype), jnp.asarray(neg, dtype)) - 1.0


def reference(x, params, num_heads, padding_mask=None):
    B, T, H = x.shape
    hd = H // num_heads
    qkv = x @ params["W_attn"].T + params["b_attn"]
    q, k, v = jnp.split(qkv, 3, axis=2)

    def to_heads(t):
        return t.reshape(B, T, num_heads, hd).transpose(0, 2, 1, 3)

    q, k, v = to_heads(q), to_heads(k), to_heads(v)
    bias = build_attn_bias(B, T, padding_mask, dtype=x.dtype)[:, None, :, :]
    s = jnp.einsum("bhqd,bhkd->bhqk", q, k) / math.sqrt(hd) + bias
    p = jax.nn.softmax(s, axis=-1)
    y = jnp.einsum("bhqk,bhkd->bhqd", p, v)
    y = y.transpose(0, 2, 1, 3).reshape(B, T, H)
    return y @ params["W_proj"].T + params["b_proj"]


# -----------------------------------------------------------------------------
if __name__ == "__main__":
    def make_inputs(key, B, T, H):
        kx, k1, k2, k3, k4 = jax.random.split(key, 5)
        bound = 1.0 / math.sqrt(H)
        params = {
            "W_attn": jax.random.uniform(k1, (3 * H, H), jnp.float32, -bound, bound),
            "b_attn": jax.random.uniform(k2, (3 * H,), jnp.float32, -bound, bound),
            "W_proj": jax.random.uniform(k3, (H, H), jnp.float32, -bound, bound),
            "b_proj": jax.random.uniform(k4, (H,), jnp.float32, -bound, bound),
        }
        x = jax.random.normal(kx, (B, T, H), jnp.float32)
        return x, params

    # --- small shape implied by the module: batch=2, seq=8, hidden=32, heads=4
    B, T, H, nh = 2, 8, 32, 4
    x, params = make_inputs(jax.random.PRNGKey(0), B, T, H)
    prep = prepare_attention_params(params, nh)           # hoisted weight prep

    # 1) f32, no padding mask
    out = jax.block_until_ready(causal_self_attention(x, prep))
    ref = reference(x, params, nh)
    np.testing.assert_allclose(np.asarray(out), np.asarray(ref), rtol=1e-4, atol=1e-4)

    # 2) f32, with padding mask (second sequence padded after position 4)
    lengths = jnp.array([T, 5])
    pmask = (jnp.arange(T)[None, :] < lengths[:, None]).astype(jnp.float32)
    out_p = jax.block_until_ready(
        causal_self_attention(x, prep, padding_mask=pmask))
    ref_p = reference(x, params, nh, padding_mask=pmask)
    np.testing.assert_allclose(np.asarray(out_p), np.asarray(ref_p),
                               rtol=1e-4, atol=1e-4)

    # 3) bf16 compute path (MXU-friendly), f32 accumulation / softmax stats
    prep_bf16 = prepare_attention_params(params, nh, compute_dtype=jnp.bfloat16)
    out_bf = jax.block_until_ready(causal_self_attention(x, prep_bf16))
    np.testing.assert_allclose(np.asarray(out_bf).astype(np.float32),
                               np.asarray(ref), rtol=5e-2, atol=5e-2)

    # 4) multi-tile shape to exercise the skip / clamp / fast / masked paths
    B2, T2, H2, nh2 = 2, 256, 256, 4        # head_dim = 64, 4 heads per group
    x2, params2 = make_inputs(jax.random.PRNGKey(1), B2, T2, H2)
    prep2 = prepare_attention_params(params2, nh2)
    out2 = jax.block_until_ready(
        causal_self_attention(x2, prep2, tq=64, tk=128))
    ref2 = reference(x2, params2, nh2)
    np.testing.assert_allclose(np.asarray(out2), np.asarray(ref2),
                               rtol=1e-3, atol=1e-3)

    lengths2 = jnp.array([T2, 200])
    pmask2 = (jnp.arange(T2)[None, :] < lengths2[:, None]).astype(jnp.float32)
    out2p = jax.block_until_ready(
        causal_self_attention(x2, prep2, padding_mask=pmask2, tq=64, tk=128))
    ref2p = reference(x2, params2, nh2, padding_mask=pmask2)
    np.testing.assert_allclose(np.asarray(out2p), np.asarray(ref2p),
                               rtol=1e-3, atol=1e-3)

    print("KERNEL_OK")
</pallas_src>

<mosaic_0001>
module attributes {stable_mosaic.version = 11 : i64} {
  func.func @_qkv_kernel(%arg0: i32, %arg1: i32, %arg2: i32, %arg3: memref<16x32xf32, #tpu.memory_space<vmem>>, %arg4: memref<32x32xf32, #tpu.memory_space<vmem>>, %arg5: memref<32x32xf32, #tpu.memory_space<vmem>>, %arg6: memref<32x32xf32, #tpu.memory_space<vmem>>, %arg7: memref<1x32xf32, #tpu.memory_space<vmem>>, %arg8: memref<1x32xf32, #tpu.memory_space<vmem>>, %arg9: memref<1x32xf32, #tpu.memory_space<vmem>>, %arg10: memref<16x32xf32, #tpu.memory_space<vmem>>, %arg11: memref<16x32xf32, #tpu.memory_space<vmem>>, %arg12: memref<16x32xf32, #tpu.memory_space<vmem>>, %arg13: memref<16x32xf32, #tpu.memory_space<vmem>>, %arg14: memref<16x32xf32, #tpu.memory_space<vmem>>, %arg15: memref<16x32xf32, #tpu.memory_space<vmem>>) attributes {dimension_semantics = [#tpu.dimension_semantics<parallel>, #tpu.dimension_semantics<parallel>, #tpu.dimension_semantics<arbitrary>], iteration_bounds = array<i64: 1, 1, 1>, scalar_prefetch = 0 : i64, scratch_operands = 3 : i64, tpu.core_type = #tpu.core_type<tc>, window_params = [{transform_indices = @transform_0, window_bounds = array<i64: 16, 32>}, {transform_indices = @transform_1, window_bounds = array<i64: 32, 32>}, {transform_indices = @transform_2, window_bounds = array<i64: 32, 32>}, {transform_indices = @transform_3, window_bounds = array<i64: 32, 32>}, {transform_indices = @transform_4, window_bounds = array<i64: 1, 32>}, {transform_indices = @transform_5, window_bounds = array<i64: 1, 32>}, {transform_indices = @transform_6, window_bounds = array<i64: 1, 32>}, {transform_indices = @transform_7, window_bounds = array<i64: 16, 32>}, {transform_indices = @transform_8, window_bounds = array<i64: 16, 32>}, {transform_indices = @transform_9, window_bounds = array<i64: 16, 32>}]} {
    %c0_i32 = arith.constant 0 : i32
    %0 = arith.cmpi eq, %arg2, %c0_i32 : i32
    %1 = arith.extui %0 : i1 to i32
    %c0_i32_0 = arith.constant 0 : i32
    %2 = arith.cmpi ne, %1, %c0_i32_0 : i32
    scf.if %2 {
      %cst_24 = arith.constant 0.000000e+00 : f32
      %22 = vector.broadcast %cst_24 : f32 to vector<16x32xf32>
      %c0_25 = arith.constant 0 : index
      %c0_26 = arith.constant 0 : index
      %23 = vector.load %arg13[%c0_25, %c0_26] : memref<16x32xf32, #tpu.memory_space<vmem>>, vector<16x32xf32>
      tpu.vector_store %arg13[%c0_25, %c0_26], %22 {strides = array<i32>} : memref<16x32xf32, #tpu.memory_space<vmem>>, vector<16x32xf32>,
      %cst_27 = arith.constant 0.000000e+00 : f32
      %24 = vector.broadcast %cst_27 : f32 to vector<16x32xf32>
      %c0_28 = arith.constant 0 : index
      %c0_29 = arith.constant 0 : index
      %25 = vector.load %arg14[%c0_28, %c0_29] : memref<16x32xf32, #tpu.memory_space<vmem>>, vector<16x32xf32>
      tpu.vector_store %arg14[%c0_28, %c0_29], %24 {strides = array<i32>} : memref<16x32xf32, #tpu.memory_space<vmem>>, vector<16x32xf32>,
      %cst_30 = arith.constant 0.000000e+00 : f32
      %26 = vector.broadcast %cst_30 : f32 to vector<16x32xf32>
      %c0_31 = arith.constant 0 : index
      %c0_32 = arith.constant 0 : index
      %27 = vector.load %arg15[%c0_31, %c0_32] : memref<16x32xf32, #tpu.memory_space<vmem>>, vector<16x32xf32>
      tpu.vector_store %arg15[%c0_31, %c0_32], %26 {strides = array<i32>} : memref<16x32xf32, #tpu.memory_space<vmem>>, vector<16x32xf32>,
    } else {
    }
    %c0 = arith.constant 0 : index
    %c0_1 = arith.constant 0 : index
    %3 = vector.load %arg3[%c0, %c0_1] : memref<16x32xf32, #tpu.memory_space<vmem>>, vector<16x32xf32>
    %c0_2 = arith.constant 0 : index
    %c0_3 = arith.constant 0 : index
    %4 = vector.load %arg13[%c0_2, %c0_3] : memref<16x32xf32, #tpu.memory_space<vmem>>, vector<16x32xf32>
    %c0_4 = arith.constant 0 : index
    %c0_5 = arith.constant 0 : index
    %5 = vector.load %arg4[%c0_4, %c0_5] : memref<32x32xf32, #tpu.memory_space<vmem>>, vector<32x32xf32>
    %cst = arith.constant dense<0.000000e+00> : vector<16x32xf32>
    %6 = tpu.matmul %3, %5, %cst {dimension_numbers = #tpu.dot_dimension_numbers<[1], [0], [0], [1], [0, 0, 1, 1], [], []>} : vector<16x32xf32>, vector<32x32xf32>, vector<16x32xf32> -> vector<16x32xf32>
    %7 = arith.addf %4, %6 : vector<16x32xf32>
    %c0_6 = arith.constant 0 : index
    %c0_7 = arith.constant 0 : index
    %8 = vector.load %arg13[%c0_6, %c0_7] : memref<16x32xf32, #tpu.memory_space<vmem>>, vector<16x32xf32>
    tpu.vector_store %arg13[%c0_6, %c0_7], %7 {strides = array<i32>} : memref<16x32xf32, #tpu.memory_space<vmem>>, vector<16x32xf32>,
    %c0_8 = arith.constant 0 : index
    %c0_9 = arith.constant 0 : index
    %9 = vector.load %arg14[%c0_8, %c0_9] : memref<16x32xf32, #tpu.memory_space<vmem>>, vector<16x32xf32>
    %c0_10 = arith.constant 0 : index
    %c0_11 = arith.constant 0 : index
    %10 = vector.load %arg5[%c0_10, %c0_11] : memref<32x32xf32, #tpu.memory_space<vmem>>, vector<32x32xf32>
    %cst_12 = arith.constant dense<0.000000e+00> : vector<16x32xf32>
    %11 = tpu.matmul %3, %10, %cst_12 {dimension_numbers = #tpu.dot_dimension_numbers<[1], [0], [0], [1], [0, 0, 1, 1], [], []>} : vector<16x32xf32>, vector<32x32xf32>, vector<16x32xf32> -> vector<16x32xf32>
    %12 = arith.addf %9, %11 : vector<16x32xf32>
    %c0_13 = arith.constant 0 : index
    %c0_14 = arith.constant 0 : index
    %13 = vector.load %arg14[%c0_13, %c0_14] : memref<16x32xf32, #tpu.memory_space<vmem>>, vector<16x32xf32>
    tpu.vector_store %arg14[%c0_13, %c0_14], %12 {strides = array<i32>} : memref<16x32xf32, #tpu.memory_space<vmem>>, vector<16x32xf32>,
    %c0_15 = arith.constant 0 : index
    %c0_16 = arith.constant 0 : index
    %14 = vector.load %arg15[%c0_15, %c0_16] : memref<16x32xf32, #tpu.memory_space<vmem>>, vector<16x32xf32>
    %c0_17 = arith.constant 0 : index
    %c0_18 = arith.constant 0 : index
    %15 = vector.load %arg6[%c0_17, %c0_18] : memref<32x32xf32, #tpu.memory_space<vmem>>, vector<32x32xf32>
    %cst_19 = arith.constant dense<0.000000e+00> : vector<16x32xf32>
    %16 = tpu.matmul %3, %15, %cst_19 {dimension_numbers = #tpu.dot_dimension_numbers<[1], [0], [0], [1], [0, 0, 1, 1], [], []>} : vector<16x32xf32>, vector<32x32xf32>, vector<16x32xf32> -> vector<16x32xf32>
    %17 = arith.addf %14, %16 : vector<16x32xf32>
    %c0_20 = arith.constant 0 : index
    %c0_21 = arith.constant 0 : index
    %18 = vector.load %arg15[%c0_20, %c0_21] : memref<16x32xf32, #tpu.memory_space<vmem>>, vector<16x32xf32>
    tpu.vector_store %arg15[%c0_20, %c0_21], %17 {strides = array<i32>} : memref<16x32xf32, #tpu.memory_space<vmem>>, vector<16x32xf32>,
    %c0_i32_22 = arith.constant 0 : i32
    %19 = arith.cmpi eq, %arg2, %c0_i32_22 : i32
    %20 = arith.extui %19 : i1 to i32
    %c0_i32_23 = arith.constant 0 : i32
    %21 = arith.cmpi ne, %20, %c0_i32_23 : i32
    scf.if %21 {
      %c0_24 = arith.constant 0 : index
      %c0_25 = arith.constant 0 : index
      %22 = vector.load %arg13[%c0_24, %c0_25] : memref<16x32xf32, #tpu.memory_space<vmem>>, vector<16x32xf32>
      %c0_26 = arith.constant 0 : index
      %c0_27 = arith.constant 0 : index
      %23 = vector.load %arg7[%c0_26, %c0_27] : memref<1x32xf32, #tpu.memory_space<vmem>>, vector<1x32xf32>
      %24 = vector.broadcast %23 : vector<1x32xf32> to vector<16x32xf32>
      %25 = arith.addf %22, %24 : vector<16x32xf32>
      %c0_28 = arith.constant 0 : index
      %c0_29 = arith.constant 0 : index
      %26 = vector.load %arg10[%c0_28, %c0_29] : memref<16x32xf32, #tpu.memory_space<vmem>>, vector<16x32xf32>
      tpu.vector_store %arg10[%c0_28, %c0_29], %25 {strides = array<i32>} : memref<16x32xf32, #tpu.memory_space<vmem>>, vector<16x32xf32>,
      %c0_30 = arith.constant 0 : index
      %c0_31 = arith.constant 0 : index
      %27 = vector.load %arg14[%c0_30, %c0_31] : memref<16x32xf32, #tpu.memory_space<vmem>>, vector<16x32xf32>
      %c0_32 = arith.constant 0 : index
      %c0_33 = arith.constant 0 : index
      %28 = vector.load %arg8[%c0_32, %c0_33] : memref<1x32xf32, #tpu.memory_space<vmem>>, vector<1x32xf32>
      %29 = vector.broadcast %28 : vector<1x32xf32> to vector<16x32xf32>
      %30 = arith.addf %27, %29 : vector<16x32xf32>
      %c0_34 = arith.constant 0 : index
      %c0_35 = arith.constant 0 : index
      %31 = vector.load %arg11[%c0_34, %c0_35] : memref<16x32xf32, #tpu.memory_space<vmem>>, vector<16x32xf32>
      tpu.vector_store %arg11[%c0_34, %c0_35], %30 {strides = array<i32>} : memref<16x32xf32, #tpu.memory_space<vmem>>, vector<16x32xf32>,
      %c0_36 = arith.constant 0 : index
      %c0_37 = arith.constant 0 : index
      %32 = vector.load %arg15[%c0_36, %c0_37] : memref<16x32xf32, #tpu.memory_space<vmem>>, vector<16x32xf32>
      %c0_38 = arith.constant 0 : index
      %c0_39 = arith.constant 0 : index
      %33 = vector.load %arg9[%c0_38, %c0_39] : memref<1x32xf32, #tpu.memory_space<vmem>>, vector<1x32xf32>
      %34 = vector.broadcast %33 : vector<1x32xf32> to vector<16x32xf32>
      %35 = arith.addf %32, %34 : vector<16x32xf32>
      %c0_40 = arith.constant 0 : index
      %c0_41 = arith.constant 0 : index
      %36 = vector.load %arg12[%c0_40, %c0_41] : memref<16x32xf32, #tpu.memory_space<vmem>>, vector<16x32xf32>
      tpu.vector_store %arg12[%c0_40, %c0_41], %35 {strides = array<i32>} : memref<16x32xf32, #tpu.memory_space<vmem>>, vector<16x32xf32>,
    } else {
    }
    return
  }
  func.func @transform_0(%arg0: i32, %arg1: i32, %arg2: i32) -> (i32, i32) {
    %c0_i32 = arith.constant 0 : i32
    return %arg0, %arg2 : i32, i32
  }
  func.func @transform_1(%arg0: i32, %arg1: i32, %arg2: i32) -> (i32, i32) {
    %c0_i32 = arith.constant 0 : i32
    return %arg2, %arg1 : i32, i32
  }
  func.func @transform_2(%arg0: i32, %arg1: i32, %arg2: i32) -> (i32, i32) {
    %c0_i32 = arith.constant 0 : i32
    return %arg2, %arg1 : i32, i32
  }
  func.func @transform_3(%arg0: i32, %arg1: i32, %arg2: i32) -> (i32, i32) {
    %c0_i32 = arith.constant 0 : i32
    return %arg2, %arg1 : i32, i32
  }
  func.func @transform_4(%arg0: i32, %arg1: i32, %arg2: i32) -> (i32, i32) {
    %c0_i32 = arith.constant 0 : i32
    %c0_i32_0 = arith.constant 0 : i32
    return %c0_i32, %arg1 : i32, i32
  }
  func.func @transform_5(%arg0: i32, %arg1: i32, %arg2: i32) -> (i32, i32) {
    %c0_i32 = arith.constant 0 : i32
    %c0_i32_0 = arith.constant 0 : i32
    return %c0_i32, %arg1 : i32, i32
  }
  func.func @transform_6(%arg0: i32, %arg1: i32, %arg2: i32) -> (i32, i32) {
    %c0_i32 = arith.constant 0 : i32
    %c0_i32_0 = arith.constant 0 : i32
    return %c0_i32, %arg1 : i32, i32
  }
  func.func @transform_7(%arg0: i32, %arg1: i32, %arg2: i32) -> (i32, i32) {
    %c0_i32 = arith.constant 0 : i32
    return %arg0, %arg1 : i32, i32
  }
  func.func @transform_8(%arg0: i32, %arg1: i32, %arg2: i32) -> (i32, i32) {
    %c0_i32 = arith.constant 0 : i32
    return %arg0, %arg1 : i32, i32
  }
  func.func @transform_9(%arg0: i32, %arg1: i32, %arg2: i32) -> (i32, i32) {
    %c0_i32 = arith.constant 0 : i32
    return %arg0, %arg1 : i32, i32
  }
}

</mosaic_0001>

<bundles_post_ra>
// kernel: tpu_custom_call.1
= control target key start
LH: loop header
LB: loop body
LE: loop exit
PB: predicated region body
PF: predicated region fallthrough
CT: control target
= control target key end

     0   :  { %15 = vsyncpa [#allocation6], 0  ;;  %s808_s0 = inlined_call_operand.hbm [shape: f32[16,32], index: 0, kind: input, shape index: {}]   ;;  %s809_s1 = inlined_call_operand.hbm [shape: f32[32,32], index: 1, kind: input, shape index: {}]   ;;  %s810_s2 = inlined_call_operand.hbm [shape: f32[32,32], index: 2, kind: input, shape index: {}]   ;;  %s811_s3 = inlined_call_operand.hbm [shape: f32[32,32], index: 3, kind: input, shape index: {}]   ;;  %s812_s4 = inlined_call_operand.vmem [shape: f32[1,32], index: 4, kind: input, shape index: {}]   ;;  %s813_s5 = inlined_call_operand.vmem [shape: f32[1,32], index: 5, kind: input, shape index: {}]   ;;  %s814_s6 = inlined_call_operand.vmem [shape: f32[1,32], index: 6, kind: input, shape index: {}]   ;;  %s815_s7 = inlined_call_operand.hbm [shape: f32[16,32], index: 7, kind: output, shape index: {0}]   ;;  %s816_s8 = inlined_call_operand.hbm [shape: f32[16,32], index: 8, kind: output, shape index: {1}]   ;;  %s817_s9 = inlined_call_operand.hbm [shape: f32[16,32], index: 9, kind: output, shape index: {2}]  }
   0x1   :  { %16 = vsyncpa [#allocation9], 0 }
   0x2   :  { %17 = vsyncpa [#allocation12], 0 }
   0x3   :  { %18 = vsyncpa [#allocation7], 0 }
   0x4   :  { %19 = vsyncpa [#allocation15], 0  ;;  %s673_s30 = smov [#allocation8]   ;;  %s674_s11 = smov [#allocation5]  }
   0x5   :  { %s37_s10 = sshll.u32 %s673_s30, 4  ;;  %s25_s12 = sshll.u32 %s674_s11, 4  ;;  %s38_s10 = int_to_ptr.vmem [resolvable:$true] %s37_s10  ;;  %s26_s12 = int_to_ptr.vmem [resolvable:$true] %s25_s12 }
   0x6   :  { %s531_s13 = scalar_lea.vmem %s38_s10, 512  ;;  %p536_p1 = scmp.lt.s32.totalorder %s38_s10, %s38_s10 }
   0x7   :  { %p532_p0 = scmp.ne.s32.totalorder %s38_s10, %s531_s13  ;;  %p537_p2 = scmp.lt.s32.totalorder %s531_s13, %s531_s13 }
   0x9   :  { %p538_p3 = por %p537_p2, %p536_p1 }
   0xb   :  { %p539_p4 = pnand %p538_p3, %p532_p0 }
   0xd   :  { %542 = shalt.err (!%p539_p4)
}
   0xe   :  { %s675_s14 = smov 128   ;;  %s676_s15 = smov 8  }
   0xf   :  { %43 = dma.hbm_to_vmem [thread:$0]  %s809_s1, 512, %s38_s10, [#allocation9], %s675_s14, %s675_s14, %s676_s15  }
  0x10   :  { %s551_s18 = scalar_lea.vmem %s26_s12, 256  ;;  %p556_p6 = scmp.lt.s32.totalorder %s26_s12, %s26_s12 }
  0x11   :  { %p552_p5 = scmp.ne.s32.totalorder %s26_s12, %s551_s18  ;;  %p557_p7 = scmp.lt.s32.totalorder %s551_s18, %s551_s18 }
  0x13   :  { %p558_p8 = por %p557_p7, %p556_p6 }
  0x15   :  { %p559_p9 = pnand %p558_p8, %p552_p5 }
  0x17   :  { %562 = shalt.err (!%p559_p9)
}
  0x18   :  { %31 = dma.hbm_to_vmem [thread:$0]  %s808_s0, 256, %s26_s12, [#allocation6], %s675_s14, %s675_s14, %s676_s15  }
  0x19   :  { %s677_s21 = smov [#allocation10]   ;;  %s678_s23 = smov [#allocation11]  }
  0x1a   :  { %s49_s22 = sshll.u32 %s677_s21, 4  ;;  %s61_s24 = sshll.u32 %s678_s23, 4  ;;  %s50_s22 = int_to_ptr.vmem [resolvable:$true] %s49_s22  ;;  %s62_s24 = int_to_ptr.vmem [resolvable:$true] %s61_s24 }
  0x1b   :  { %s571_s1 = scalar_lea.vmem %s50_s22, 512  ;;  %p576_p11 = scmp.lt.s32.totalorder %s50_s22, %s50_s22 }
  0x1c   :  { %p572_p10 = scmp.ne.s32.totalorder %s50_s22, %s571_s1  ;;  %p577_p12 = scmp.lt.s32.totalorder %s571_s1, %s571_s1 }
  0x1e   :  { %p578_p13 = por %p577_p12, %p576_p11 }
  0x20   :  { %p579_p0 = pnand %p578_p13, %p572_p10 }
  0x22   :  { %582 = shalt.err (!%p579_p0)
}
  0x23   :  { %55 = dma.hbm_to_vmem [thread:$0]  %s810_s2, 512, %s50_s22, [#allocation9], %s675_s14, %s675_s14, %s676_s15  }
  0x24   :  { %s591_s0 = scalar_lea.vmem %s62_s24, 512  ;;  %p596_p2 = scmp.lt.s32.totalorder %s62_s24, %s62_s24 }
  0x25   :  { %p592_p1 = scmp.ne.s32.totalorder %s62_s24, %s591_s0  ;;  %p597_p3 = scmp.lt.s32.totalorder %s591_s0, %s591_s0 }
  0x27   :  { %p598_p4 = por %p597_p3, %p596_p2 }
  0x29   :  { %p599_p5 = pnand %p598_p4, %p592_p1 }
  0x2b   :  { %602 = shalt.err (!%p599_p5)
}
  0x2c   :  { %67 = dma.hbm_to_vmem [thread:$0]  %s811_s3, 512, %s62_s24, [#allocation12], %s675_s14, %s675_s14, %s676_s15  }
  0x2d   :  { %663 = dma.done.wait [#allocation6], 256  }
  0x2e   :  { %664 = vsyncadd [#allocation6], 4294967040 }
  0x2f   :  { %665 = dma.done.wait [#allocation9], 1024  }
  0x30   :  { %666 = vsyncadd [#allocation9], 4294966272 }
  0x31   :  { %667 = dma.done.wait [#allocation12], 512  }
  0x32   :  { %668 = vsyncadd [#allocation12], 4294966784  ;;  %vm90_vm0 = vcmask 261120   ;;  %v679_v0 = vmov 0.0   ;;  %v104_v1 = vld [vmem:[#allocation8 + $0x18] sm:$0xff]  ;;  %v103_v2 = vld [vmem:[#allocation8 + $0x10] sm:$0xff] }
  0x33   :  { %92 = vst.msk [vmem:[#allocation2 + $0x8] sm:$0xff] %vm90_vm0, %v679_v0  ;;  %91 = vst.msk [vmem:[#allocation2] sm:$0xff] %vm90_vm0, %v679_v0  ;;  %480 = vmatprep.subr.mxu0 %v104_v1  ;;  %v196_v3 = vld [vmem:[#allocation10 + $0x18] sm:$0xff]  ;;  %v97_v4 = vld [vmem:[#allocation5] sm:$0xff]  ;;  %s680_s29 = smov [#allocation13]  }
  0x34   :  { %93 = vst.msk [vmem:[#allocation3] sm:$0xff] %vm90_vm0, %v679_v0  ;;  %94 = vst.msk [vmem:[#allocation3 + $0x8] sm:$0xff] %vm90_vm0, %v679_v0  ;;  %481 = vmatpush3.msra.mxu0 %v104_v1  ;;  %v102_v5 = vld [vmem:[#allocation8 + $0x8] sm:$0xff]  ;;  %491 = vmatprep.subr.mxu1 %v196_v3  ;;  %v195_v6 = vld [vmem:[#allocation10 + $0x10] sm:$0xff]  ;;  %s408_s30 = sshll.u32 %s680_s29, 4  ;;  %s409_s30 = int_to_ptr.vmem [resolvable:$true] %s408_s30 }
  0x35   :  { %95 = vst.msk [vmem:[#allocation4] sm:$0xff] %vm90_vm0, %v679_v0  ;;  %96 = vst.msk [vmem:[#allocation4 + $0x8] sm:$0xff] %vm90_vm0, %v679_v0  ;;  %482 = vmatprep.subr.mxu0 %v103_v2  ;;  %492 = vmatpush3.msra.mxu1 %v196_v3  ;;  %v101_v7 = vld [vmem:[#allocation8] sm:$0xff]  ;;  %v194_v8 = vld [vmem:[#allocation10 + $0x8] sm:$0xff]  ;;  %s603_s17 = scalar_lea.vmem %s409_s30, 256  ;;  %p608_p7 = scmp.lt.s32.totalorder %s409_s30, %s409_s30 }
  0x36   :  { %483 = vmatpush3.msra.mxu0 %v103_v2  ;;  %488 = vmatprep.mubr.msk.f32.mxu0 %vm90_vm0, %v97_v4  ;;  %v98_v9 = vld [vmem:[#allocation5 + $0x8] sm:$0xff]  ;;  %v193_v11 = vld [vmem:[#allocation10] sm:$0xff]  ;;  %v280_v12 = vld [vmem:[#allocation11 + $0x10] sm:$0xff]  ;;  %p604_p6 = scmp.ne.s32.totalorder %s409_s30, %s603_s17  ;;  %p609_p8 = scmp.lt.s32.totalorder %s603_s17, %s603_s17 }
  0x37   :  { %484 = vmatprep.subr.mxu0 %v102_v5  ;;  %493 = vmatprep.subr.mxu1 %v195_v6  ;;  %v281_v10 = vld [vmem:[#allocation11 + $0x18] sm:$0xff]  ;;  %v279_v13 = vld [vmem:[#allocation11 + $0x8] sm:$0xff]  ;;  %v278_v14 = vld [vmem:[#allocation11] sm:$0xff] }
  0x38   :  { %485 = vmatpush3.msra.mxu0 %v102_v5  ;;  %494 = vmatpush3.msra.mxu1 %v195_v6  ;;  %v459_v30 = vld [vmem:[%s812_s4] ss:$0 sm:$0xff]  ;;  %s681_s4 = smov [#allocation14]   ;;  %p610_p9 = por %p609_p8, %p608_p7 }
  0x39   :  { %486 = vmatprep.subr.mxu0 %v101_v7  ;;  %495 = vmatprep.subr.mxu1 %v194_v8  ;;  %v460_v36 = vld [vmem:[%s813_s5] ss:$0 sm:$0xff]  ;;  %s420_s12 = sshll.u32 %s681_s4, 4  ;;  %s421_s12 = int_to_ptr.vmem [resolvable:$true] %s420_s12 }
  0x3a   :  { %487 = vmatpush3.msra.mxu0 %v101_v7  ;;  %496 = vmatpush3.msra.mxu1 %v194_v8  ;;  %v100_v15 = vld [vmem:[#allocation2 + $0x8] sm:$0xff]  ;;  %v99_v17 = vld [vmem:[#allocation2] sm:$0xff]  ;;  %p611_p10 = pnand %p610_p9, %p604_p6 }
  0x3b   :  { %489 = vmatmul.mubr.msk.f32.vlgmr.msra.gmra.mxu0 %vm90_vm0, %v98_v9  ;;  %502 = vmatprep.subr.mxu0 %v281_v10  ;;  %v192_v20 = vld [vmem:[#allocation3 + $0x8] sm:$0xff]  ;;  %v191_v23 = vld [vmem:[#allocation3] sm:$0xff]  ;;  %v461_v41 = vld [vmem:[%s814_s6] ss:$0 sm:$0xff] }
  0x3c   :  { %503 = vmatpush3.msra.mxu0 %v281_v10  ;;  %497 = vmatprep.subr.mxu1 %v193_v11  ;;  %v277_v26 = vld [vmem:[#allocation4 + $0x8] sm:$0xff]  ;;  %v276_v29 = vld [vmem:[#allocation4] sm:$0xff] }
  0x3d   :  { %504 = vmatprep.subr.mxu0 %v280_v12  ;;  %498 = vmatpush3.msra.mxu1 %v193_v11 }
  0x3e   :  { %505 = vmatpush3.msra.mxu0 %v280_v12  ;;  %499 = vmatprep.mubr.msk.f32.mxu1 %vm90_vm0, %v97_v4 }
  0x3f   :  { %506 = vmatprep.subr.mxu0 %v279_v13  ;;  %500 = vmatmul.mubr.msk.f32.vlgmr.msra.gmra.mxu1 %vm90_vm0, %v98_v9 }
  0x40   :  { %507 = vmatpush3.msra.mxu0 %v279_v13  ;;  %510 = vmatprep.mubr.msk.f32.mxu0 %vm90_vm0, %v97_v4 }
  0x41   :  { %508 = vmatprep.subr.mxu0 %v278_v14 }
  0x42   :  { %509 = vmatpush3.msra.mxu0 %v278_v14 }
  0x43   :  { %511 = vmatmul.mubr.msk.f32.vlgmr.msra.gmra.mxu0 %vm90_vm0, %v98_v9 }
  0xfb   :  { %v490_v16 = vpop.f32.mrf.mxu0 }
  0xfc   :  { %v188_v18 = vadd.f32 %v490_v16, %v100_v15 }
  0xfd   :  { %v178_v19 = vpop.f32.mrf.mxu0 }
  0xfe   :  { %190 = vst.msk [vmem:[#allocation2 + $0x8] sm:$0xff] %vm90_vm0, %v188_v18  ;;  %v187_v21 = vadd.f32 %v178_v19, %v99_v17 }
  0xff   :  { %v501_v22 = vpop.f32.mrf.mxu1 }
 0x100   :  { %189 = vst.msk [vmem:[#allocation2] sm:$0xff] %vm90_vm0, %v187_v21  ;;  %v273_v24 = vadd.f32 %v501_v22, %v192_v20 }
 0x101   :  { %v263_v25 = vpop.f32.mrf.mxu1 }
 0x102   :  { %275 = vst.msk [vmem:[#allocation3 + $0x8] sm:$0xff] %vm90_vm0, %v273_v24  ;;  %v272_v27 = vadd.f32 %v263_v25, %v191_v23 }
 0x103   :  { %v512_v28 = vpop.f32.mrf.mxu0 }
 0x104   :  { %274 = vst.msk [vmem:[#allocation3] sm:$0xff] %vm90_vm0, %v272_v27  ;;  %v358_v31 = vadd.f32 %v512_v28, %v277_v26 }
 0x105   :  { %v348_v32 = vpop.f32.mrf.mxu0  ;;  %v365_v33 = vld [vmem:[#allocation2 + $0x8] sm:$0xff] }
 0x106   :  { %360 = vst.msk [vmem:[#allocation4 + $0x8] sm:$0xff] %vm90_vm0, %v358_v31  ;;  %v357_v34 = vadd.f32 %v348_v32, %v276_v29  ;;  %v374_v35 = vadd.f32 %v459_v30, %v365_v33 }
 0x107   :  { %v364_v37 = vld [vmem:[#allocation2] sm:$0xff] }
 0x108   :  { %359 = vst.msk [vmem:[#allocation4] sm:$0xff] %vm90_vm0, %v357_v34  ;;  %v373_v38 = vadd.f32 %v459_v30, %v364_v37  ;;  %376 = vst.msk [vmem:[#allocation13 + $0x8] sm:$0xff] %vm90_vm0, %v374_v35 }
 0x109   :  { %v378_v39 = vld [vmem:[#allocation3 + $0x8] sm:$0xff] }
 0x10a   :  { %v387_v40 = vadd.f32 %v460_v36, %v378_v39  ;;  %375 = vst.msk [vmem:[#allocation13] sm:$0xff] %vm90_vm0, %v373_v38 }
 0x10b   :  { %v377_v42 = vld [vmem:[#allocation3] sm:$0xff] }
 0x10c   :  { %614 = shalt.err (!%p611_p10)
}
 0x10d   :  { %414 = dma.vmem_to_hbm [thread:$0]  %s409_s30, 256, %s815_s7, [#allocation7], %s675_s14, %s675_s14, %s676_s15   ;;  %v386_v43 = vadd.f32 %v460_v36, %v377_v42  ;;  %389 = vst.msk [vmem:[#allocation14 + $0x8] sm:$0xff] %vm90_vm0, %v387_v40  ;;  %v391_v44 = vld [vmem:[#allocation4 + $0x8] sm:$0xff] }
 0x10e   :  { %s682_s6 = smov [#allocation16]   ;;  %v400_v45 = vadd.f32 %v461_v41, %v391_v44  ;;  %s623_s20 = scalar_lea.vmem %s421_s12, 256 }
 0x10f   :  { %s432_s19 = sshll.u32 %s682_s6, 4  ;;  %388 = vst.msk [vmem:[#allocation14] sm:$0xff] %vm90_vm0, %v386_v43  ;;  %p624_p11 = scmp.ne.s32.totalorder %s421_s12, %s623_s20  ;;  %s433_s19 = int_to_ptr.vmem [resolvable:$true] %s432_s19 }
 0x110   :  { %p628_p12 = scmp.lt.s32.totalorder %s421_s12, %s421_s12  ;;  %p629_p13 = scmp.lt.s32.totalorder %s623_s20, %s623_s20 }
 0x112   :  { %p630_p0 = por %p629_p13, %p628_p12 }
 0x114   :  { %p631_p1 = pnand %p630_p0, %p624_p11 }
 0x116   :  { %634 = shalt.err (!%p631_p1)
}
 0x117   :  { %426 = dma.vmem_to_hbm [thread:$0]  %s421_s12, 256, %s816_s8, [#allocation15], %s675_s14, %s675_s14, %s676_s15   ;;  %v390_v46 = vld [vmem:[#allocation4] sm:$0xff]  ;;  %402 = vst.msk [vmem:[#allocation16 + $0x8] sm:$0xff] %vm90_vm0, %v400_v45 }
 0x118   :  { %v399_v47 = vadd.f32 %v461_v41, %v390_v46  ;;  %s643_s22 = scalar_lea.vmem %s433_s19, 256  ;;  %p648_p3 = scmp.lt.s32.totalorder %s433_s19, %s433_s19 }
 0x119   :  { %p644_p2 = scmp.ne.s32.totalorder %s433_s19, %s643_s22  ;;  %p649_p4 = scmp.lt.s32.totalorder %s643_s22, %s643_s22 }
 0x11a   :  { %401 = vst.msk [vmem:[#allocation16] sm:$0xff] %vm90_vm0, %v399_v47 }
 0x11b   :  { %p650_p5 = por %p649_p4, %p648_p3 }
 0x11d   :  { %p651_p6 = pnand %p650_p5, %p644_p2 }
 0x11f   :  { %654 = shalt.err (!%p651_p6)
}
 0x120   :  { %438 = dma.vmem_to_hbm [thread:$0]  %s433_s19, 256, %s817_s9, [#allocation15], %s675_s14, %s675_s14, %s676_s15  }
 0x121   :  { %669 = dma.done.wait [#allocation7], 256  }
 0x122   :  { %670 = vsyncadd [#allocation7], 4294967040 }
 0x123   :  { %671 = dma.done.wait [#allocation15], 512  }
 0x124   :  { %672 = vsyncadd [#allocation15], 4294966784 }
 0x125   :  { %448 = vsyncpa [#allocation6], 1 }
 0x126   :  { %449 = vsyncpa [#allocation9], 1 }
 0x127   :  { %450 = vsyncpa [#allocation12], 1 }
 0x128   :  { %451 = vsyncpa [#allocation7], 1 }
 0x129   :  { %452 = vsyncpa [#allocation15], 1 }

</bundles_post_ra>
